<compile_context>
chip_gen: v7x
topology: tpu7x:2x2x1
jax: 0.10.0
libtpu: 0.0.40
codegen_flags: <defaults>
</compile_context>

<pallas_src>
import functools
import math

import jax
import jax.numpy as jnp
from jax.experimental import pallas as pl
from jax.experimental.pallas import tpu as pltpu


def transformer_stack_kernel(x_ref, wqkv_ref, bqkv_ref, wp_ref, bp_ref,
                             g_ref, bln_ref, amask_ref, o_ref,
                             *, n_head, q_len, num_layer, eps):
    """All num_layer Blocks (shared params) for one batch element, fused."""
    H = n_head
    x = x_ref[0]                                   # [L, E] f32
    L, E = x.shape
    HE = H * E

    # Weights / constants loaded once, reused across the unrolled layer loop.
    wqkv = wqkv_ref[...]                           # [q_len*E, 3*HE]  (q|k|v)
    bqkv = bqkv_ref[0]                             # [3*HE]
    wp = wp_ref[...]                               # [HE, E]
    bp = bp_ref[0]                                 # [E]
    g = g_ref[0]                                   # [E]
    bln = bln_ref[0]                               # [E]
    amask = amask_ref[...]                         # [H*L, H*L] additive mask

    row_idx = jax.lax.broadcasted_iota(jnp.int32, (L, E), 0)

    for _ in range(num_layer):
        # ---- causal conv taps: X_cat = [shift_{q_len-1}(x) | ... | x] -----
        taps = []
        for k in range(q_len):
            s = q_len - 1 - k
            if s == 0:
                taps.append(x)
            else:
                taps.append(jnp.where(row_idx >= s,
                                      pltpu.roll(x, s, axis=0),
                                      jnp.zeros_like(x)))
        x_cat = jnp.concatenate(taps, axis=-1)      # [L, q_len*E]

        # ---- one fused matmul producing q (pre-scaled), k and v ------------
        qkv = jnp.dot(x_cat, wqkv,
                      preferred_element_type=jnp.float32) + bqkv   # [L, 3*HE]

        # Head-stacked (along sublanes) q/k/v: [H*L, E].
        q_s = jnp.concatenate(
            [qkv[:, h * E:(h + 1) * E] for h in range(H)], axis=0)
        k_s = jnp.concatenate(
            [qkv[:, HE + h * E:HE + (h + 1) * E] for h in range(H)], axis=0)
        v_s = jnp.concatenate(
            [qkv[:, 2 * HE + h * E:2 * HE + (h + 1) * E] for h in range(H)],
            axis=0)

        # ---- all heads in one matmul; block-diagonal causal additive mask --
        scores = jnp.dot(q_s, k_s.T, preferred_element_type=jnp.float32)
        scores = scores + amask                     # 0 (keep) / -1e9 (mask)
        scores = scores - jnp.max(scores, axis=-1, keepdims=True)
        p = jnp.exp(scores)
        p = p * pl.reciprocal(jnp.sum(p, axis=-1, keepdims=True), approx=True)
        # attn_dropout: identity (eval mode)
        attn_s = jnp.dot(p, v_s, preferred_element_type=jnp.float32)  # [H*L,E]

        # merge_heads: [H*L, E] -> [L, H*E]
        merged = jnp.concatenate(
            [attn_s[h * L:(h + 1) * L, :] for h in range(H)], axis=-1)

        # ---- c_proj + (identity) resid dropout + residual + LayerNorm ------
        y = x + jnp.dot(merged, wp, preferred_element_type=jnp.float32) + bp
        mu = jnp.mean(y, axis=-1, keepdims=True)
        var = jnp.mean((y - mu) ** 2, axis=-1, keepdims=True)
        x = g * ((y - mu) / jnp.sqrt(var + eps)) + bln

    o_ref[0] = x


def prepare_params(params, *, n_head, q_len, scale):
    """One-time host-side weight fusion.

    Builds W_fused [q_len*E, 3*HE] = [Wq/sqrt(E) | Wk | Wv(last tap rows)] so
    that conv taps, query, key and value all come out of a single matmul on a
    lane-concatenated [L, q_len*E] input.
    """
    E, HE = params["wv"].shape
    wqk = params["wqk"].reshape(q_len * E, 2 * HE)   # tap-major row stacking
    wq, wk = wqk[:, :HE], wqk[:, HE:]
    bq, bk = params["bqk"][0, :HE], params["bqk"][0, HE:]
    if scale:
        inv = 1.0 / math.sqrt(E)
        wq = wq * inv
        bq = bq * inv
    wv_full = jnp.zeros((q_len * E, HE), params["wv"].dtype)
    wv_full = wv_full.at[(q_len - 1) * E:, :].set(params["wv"])
    w_fused = jnp.concatenate([wq, wk, wv_full], axis=1)           # [q_len*E, 3HE]
    b_fused = jnp.concatenate([bq, bk, params["bv"][0]])[None, :]  # [1, 3HE]
    return {"w_fused": w_fused, "b_fused": b_fused,
            "wp": params["wp"], "bp": params["bp"],
            "g": params["g"], "bln": params["bln"]}


def build_attn_mask(n_head, L):
    """Additive mask for head-stacked scores: 0 on same-head causal entries,
    -1e9 elsewhere (after exp both paths give exactly 0 for masked entries,
    matching the reference's -1e9 masking)."""
    t = jnp.arange(L)
    causal = t[:, None] >= t[None, :]
    h = jnp.arange(n_head)
    same_head = h[:, None] == h[None, :]
    full = (same_head[:, None, :, None] & causal[None, :, None, :])
    full = full.reshape(n_head * L, n_head * L)
    return jnp.where(full, 0.0, -1e9).astype(jnp.float32)


def transformer_model(x, params, *, n_embd, n_head, q_len, scale, num_layer):
    """TransformerModel.forward: concat zero embedding, then num_layer Blocks
    fused into ONE pallas_call (all blocks share parameters, matching the
    reference module which deep-copies a single Block at init)."""
    B, L, input_dim = x.shape
    E = n_embd + input_dim
    HE = n_head * E
    x = jnp.concatenate([x, jnp.zeros((B, L, n_embd), x.dtype)],
                        axis=2).astype(jnp.float32)

    fused = prepare_params(params, n_head=n_head, q_len=q_len, scale=scale)
    amask = build_attn_mask(n_head, L)

    kern = functools.partial(transformer_stack_kernel, n_head=n_head,
                             q_len=q_len, num_layer=num_layer, eps=1e-5)
    return pl.pallas_call(
        kern,
        out_shape=jax.ShapeDtypeStruct((B, L, E), jnp.float32),
        grid=(B,),
        in_specs=[
            pl.BlockSpec((1, L, E), lambda b: (b, 0, 0)),             # x
            pl.BlockSpec((q_len * E, 3 * HE), lambda b: (0, 0)),      # fused W
            pl.BlockSpec((1, 3 * HE), lambda b: (0, 0)),              # fused b
            pl.BlockSpec((HE, E), lambda b: (0, 0)),                  # W proj
            pl.BlockSpec((1, E), lambda b: (0, 0)),                   # b proj
            pl.BlockSpec((1, E), lambda b: (0, 0)),                   # LN gamma
            pl.BlockSpec((1, E), lambda b: (0, 0)),                   # LN beta
            pl.BlockSpec((n_head * L, n_head * L), lambda b: (0, 0)),  # mask
        ],
        out_specs=pl.BlockSpec((1, L, E), lambda b: (b, 0, 0)),
        compiler_params=pltpu.CompilerParams(
            dimension_semantics=("parallel",)),
    )(x, fused["w_fused"], fused["b_fused"], fused["wp"], fused["bp"],
      fused["g"], fused["bln"], amask)


# ------------------------- pure-JAX reference ------------------------------
def _reference_block(x, p, *, n_head, q_len, scale, eps=1e-5):
    B, L, E = x.shape
    HE = n_head * E
    v = x @ p["wv"] + p["bv"][0]
    xpad = jnp.pad(x, ((0, 0), (q_len - 1, 0), (0, 0)))
    qk = sum(xpad[:, k:k + L, :] @ p["wqk"][k] for k in range(q_len)) + p["bqk"][0]
    q = qk[..., :HE].reshape(B, L, n_head, E).transpose(0, 2, 1, 3)
    kk = qk[..., HE:].reshape(B, L, n_head, E).transpose(0, 2, 1, 3)
    vv = v.reshape(B, L, n_head, E).transpose(0, 2, 1, 3)
    scores = jnp.einsum("bhqe,bhke->bhqk", q, kk)
    if scale:
        scores = scores / math.sqrt(E)
    mask = jnp.tril(jnp.ones((L, L), jnp.float32))
    scores = scores * mask + (-1e9) * (1.0 - mask)
    pa = jax.nn.softmax(scores, axis=-1)
    a = jnp.einsum("bhqk,bhke->bhqe", pa, vv).transpose(0, 2, 1, 3).reshape(B, L, HE)
    y = x + (a @ p["wp"] + p["bp"][0])
    mu = y.mean(-1, keepdims=True)
    sig = ((y - mu) ** 2).mean(-1, keepdims=True)
    return p["g"][0] * (y - mu) / jnp.sqrt(sig + eps) + p["bln"][0]


def _reference_model(x, p, *, n_embd, n_head, q_len, scale, num_layer):
    B, L, _ = x.shape
    x = jnp.concatenate([x, jnp.zeros((B, L, n_embd), x.dtype)], axis=2)
    for _ in range(num_layer):
        x = _reference_block(x, p, n_head=n_head, q_len=q_len, scale=scale)
    return x


# ----------------------------------------------------------------------------
if __name__ == "__main__":
    # TransformerModel(input_dim=4, n_head=2, sub_len=unused(dense mask),
    #                  num_layer=2, n_embd=28, forecast_history=8,
    #                  dropout=0.1, scale_att=True, q_len=3)
    B, L = 2, 8
    input_dim, n_embd, n_head, q_len, num_layer = 4, 28, 2, 3, 2
    scale_att = True
    E = n_embd + input_dim            # block embedding dim = 32
    HE = n_head * E

    key = jax.random.PRNGKey(0)
    k1, k2, k3, k4, k5 = jax.random.split(key, 5)

    # deterministic synthetic parameters (Conv1D: normal std=0.02, bias 0;
    # LayerNorm: gamma=1, beta=0).  All layers share the same params
    # (module deep-copies one Block).
    params = {
        "wv":  jax.random.normal(k1, (E, HE), jnp.float32) * 0.02,
        "bv":  jnp.zeros((1, HE), jnp.float32),
        "wqk": jax.random.normal(k2, (q_len, E, 2 * HE), jnp.float32) * 0.02,
        "bqk": jax.random.normal(k3, (1, 2 * HE), jnp.float32) * 0.02,
        "wp":  jax.random.normal(k4, (HE, E), jnp.float32) * 0.02,
        "bp":  jnp.zeros((1, E), jnp.float32),
        "g":   jnp.ones((1, E), jnp.float32),
        "bln": jnp.zeros((1, E), jnp.float32),
    }

    x = jax.random.normal(k5, (B, L, input_dim), jnp.float32)

    out = transformer_model(x, params, n_embd=n_embd, n_head=n_head,
                            q_len=q_len, scale=scale_att, num_layer=num_layer)
    out = jax.block_until_ready(out)

    ref = _reference_model(x, params, n_embd=n_embd, n_head=n_head,
                           q_len=q_len, scale=scale_att, num_layer=num_layer)
    assert out.shape == (B, L, E)
    # slightly looser than f32-exact because of the EUP approx reciprocal
    assert jnp.allclose(out, ref, atol=2e-3, rtol=2e-3), \
        f"max err {jnp.max(jnp.abs(out - ref))}"

    print("KERNEL_OK")
</pallas_src>

<mosaic_0001>
module attributes {stable_mosaic.version = 11 : i64} {
  func.func @transformer_stack_kernel(%arg0: i32, %arg1: memref<1x8x32xf32, #tpu.memory_space<vmem>>, %arg2: memref<96x192xf32, #tpu.memory_space<vmem>>, %arg3: memref<1x192xf32, #tpu.memory_space<vmem>>, %arg4: memref<64x32xf32, #tpu.memory_space<vmem>>, %arg5: memref<1x32xf32, #tpu.memory_space<vmem>>, %arg6: memref<1x32xf32, #tpu.memory_space<vmem>>, %arg7: memref<1x32xf32, #tpu.memory_space<vmem>>, %arg8: memref<16x16xf32, #tpu.memory_space<vmem>>, %arg9: memref<1x8x32xf32, #tpu.memory_space<vmem>>) attributes {dimension_semantics = [#tpu.dimension_semantics<parallel>], iteration_bounds = array<i64: 2>, scalar_prefetch = 0 : i64, scratch_operands = 0 : i64, tpu.core_type = #tpu.core_type<tc>, window_params = [{transform_indices = @transform_0, window_bounds = array<i64: 1, 8, 32>}, {pipeline_mode = #tpu.pipeline_mode<synchronous>, transform_indices = @transform_1, window_bounds = array<i64: 96, 192>}, {pipeline_mode = #tpu.pipeline_mode<synchronous>, transform_indices = @transform_2, window_bounds = array<i64: 1, 192>}, {pipeline_mode = #tpu.pipeline_mode<synchronous>, transform_indices = @transform_3, window_bounds = array<i64: 64, 32>}, {pipeline_mode = #tpu.pipeline_mode<synchronous>, transform_indices = @transform_4, window_bounds = array<i64: 1, 32>}, {pipeline_mode = #tpu.pipeline_mode<synchronous>, transform_indices = @transform_5, window_bounds = array<i64: 1, 32>}, {pipeline_mode = #tpu.pipeline_mode<synchronous>, transform_indices = @transform_6, window_bounds = array<i64: 1, 32>}, {pipeline_mode = #tpu.pipeline_mode<synchronous>, transform_indices = @transform_7, window_bounds = array<i64: 16, 16>}, {transform_indices = @transform_8, window_bounds = array<i64: 1, 8, 32>}]} {
    %c0 = arith.constant 0 : index
    %c0_0 = arith.constant 0 : index
    %c0_1 = arith.constant 0 : index
    %0 = vector.load %arg1[%c0, %c0_0, %c0_1] : memref<1x8x32xf32, #tpu.memory_space<vmem>>, vector<1x8x32xf32>
    %1 = vector.shape_cast %0 : vector<1x8x32xf32> to vector<8x32xf32>
    %c0_2 = arith.constant 0 : index
    %c0_3 = arith.constant 0 : index
    %2 = vector.load %arg2[%c0_2, %c0_3] : memref<96x192xf32, #tpu.memory_space<vmem>>, vector<96x192xf32>
    %c0_4 = arith.constant 0 : index
    %c0_5 = arith.constant 0 : index
    %3 = vector.load %arg3[%c0_4, %c0_5] : memref<1x192xf32, #tpu.memory_space<vmem>>, vector<1x192xf32>
    %4 = vector.shape_cast %3 : vector<1x192xf32> to vector<192xf32>
    %c0_6 = arith.constant 0 : index
    %c0_7 = arith.constant 0 : index
    %5 = vector.load %arg4[%c0_6, %c0_7] : memref<64x32xf32, #tpu.memory_space<vmem>>, vector<64x32xf32>
    %c0_8 = arith.constant 0 : index
    %c0_9 = arith.constant 0 : index
    %6 = vector.load %arg5[%c0_8, %c0_9] : memref<1x32xf32, #tpu.memory_space<vmem>>, vector<1x32xf32>
    %7 = vector.shape_cast %6 : vector<1x32xf32> to vector<32xf32>
    %c0_10 = arith.constant 0 : index
    %c0_11 = arith.constant 0 : index
    %8 = vector.load %arg6[%c0_10, %c0_11] : memref<1x32xf32, #tpu.memory_space<vmem>>, vector<1x32xf32>
    %9 = vector.shape_cast %8 : vector<1x32xf32> to vector<32xf32>
    %c0_12 = arith.constant 0 : index
    %c0_13 = arith.constant 0 : index
    %10 = vector.load %arg7[%c0_12, %c0_13] : memref<1x32xf32, #tpu.memory_space<vmem>>, vector<1x32xf32>
    %11 = vector.shape_cast %10 : vector<1x32xf32> to vector<32xf32>
    %c0_14 = arith.constant 0 : index
    %c0_15 = arith.constant 0 : index
    %12 = vector.load %arg8[%c0_14, %c0_15] : memref<16x16xf32, #tpu.memory_space<vmem>>, vector<16x16xf32>
    %13 = tpu.iota {dimensions = array<i32: 0>} : vector<8x32xi32>
    %c2_i32 = arith.constant 2 : i32
    %14 = vector.broadcast %c2_i32 : i32 to vector<8x32xi32>
    %15 = arith.cmpi sge, %13, %14 : vector<8x32xi32>
    %c2_i32_16 = arith.constant 2 : i32
    %16 = tpu.dynamic_rotate %1 by %c2_i32_16 dim 0 : vector<8x32xf32>, i32 -> vector<8x32xf32>
    %cst = arith.constant 0.000000e+00 : f32
    %17 = vector.broadcast %cst : f32 to vector<8x32xf32>
    %18 = arith.select %15, %16, %17 : vector<8x32xi1>, vector<8x32xf32>
    %c1_i32 = arith.constant 1 : i32
    %19 = vector.broadcast %c1_i32 : i32 to vector<8x32xi32>
    %20 = arith.cmpi sge, %13, %19 : vector<8x32xi32>
    %c1_i32_17 = arith.constant 1 : i32
    %21 = tpu.dynamic_rotate %1 by %c1_i32_17 dim 0 : vector<8x32xf32>, i32 -> vector<8x32xf32>
    %cst_18 = arith.constant 0.000000e+00 : f32
    %22 = vector.broadcast %cst_18 : f32 to vector<8x32xf32>
    %23 = arith.select %20, %21, %22 : vector<8x32xi1>, vector<8x32xf32>
    %24 = tpu.concatenate %18, %23, %1 in 1 : vector<8x32xf32>, vector<8x32xf32>, vector<8x32xf32> -> vector<8x96xf32>
    %cst_19 = arith.constant dense<0.000000e+00> : vector<8x192xf32>
    %25 = tpu.matmul %24, %2, %cst_19 {dimension_numbers = #tpu.dot_dimension_numbers<[1], [0], [0], [1], [0, 0, 1, 1], [], []>} : vector<8x96xf32>, vector<96x192xf32>, vector<8x192xf32> -> vector<8x192xf32>
    %26 = vector.shape_cast %4 : vector<192xf32> to vector<1x192xf32>
    %27 = vector.broadcast %26 : vector<1x192xf32> to vector<8x192xf32>
    %28 = arith.addf %25, %27 : vector<8x192xf32>
    %29 = vector.extract_strided_slice %28 {offsets = [0, 0], sizes = [8, 32], strides = [1, 1]} : vector<8x192xf32> to vector<8x32xf32>
    %30 = vector.extract_strided_slice %28 {offsets = [0, 32], sizes = [8, 32], strides = [1, 1]} : vector<8x192xf32> to vector<8x32xf32>
    %31 = tpu.concatenate %29, %30 in 0 : vector<8x32xf32>, vector<8x32xf32> -> vector<16x32xf32>
    %32 = vector.extract_strided_slice %28 {offsets = [0, 64], sizes = [8, 32], strides = [1, 1]} : vector<8x192xf32> to vector<8x32xf32>
    %33 = vector.extract_strided_slice %28 {offsets = [0, 96], sizes = [8, 32], strides = [1, 1]} : vector<8x192xf32> to vector<8x32xf32>
    %34 = tpu.concatenate %32, %33 in 0 : vector<8x32xf32>, vector<8x32xf32> -> vector<16x32xf32>
    %35 = vector.extract_strided_slice %28 {offsets = [0, 128], sizes = [8, 32], strides = [1, 1]} : vector<8x192xf32> to vector<8x32xf32>
    %36 = vector.extract_strided_slice %28 {offsets = [0, 160], sizes = [8, 32], strides = [1, 1]} : vector<8x192xf32> to vector<8x32xf32>
    %37 = tpu.concatenate %35, %36 in 0 : vector<8x32xf32>, vector<8x32xf32> -> vector<16x32xf32>
    %38 = tpu.transpose %34, [1, 0] : vector<16x32xf32> -> vector<32x16xf32>
    %cst_20 = arith.constant dense<0.000000e+00> : vector<16x16xf32>
    %39 = tpu.matmul %31, %38, %cst_20 {dimension_numbers = #tpu.dot_dimension_numbers<[1], [0], [0], [1], [0, 0, 1, 1], [], []>} : vector<16x32xf32>, vector<32x16xf32>, vector<16x16xf32> -> vector<16x16xf32>
    %40 = arith.addf %39, %12 : vector<16x16xf32>
    %cst_21 = arith.constant dense<0xFF800000> : vector<16xf32>
    %41 = vector.multi_reduction <maximumf>, %40, %cst_21 [1] : vector<16x16xf32> to vector<16xf32>
    %42 = vector.shape_cast %41 : vector<16xf32> to vector<16x1xf32>
    %43 = vector.broadcast %42 : vector<16x1xf32> to vector<16x16xf32>
    %44 = arith.subf %40, %43 : vector<16x16xf32>
    %45 = math.exp %44 : vector<16x16xf32>
    %cst_22 = arith.constant dense<0.000000e+00> : vector<16xf32>
    %46 = vector.multi_reduction <add>, %45, %cst_22 [1] : vector<16x16xf32> to vector<16xf32>
    %47 = vector.shape_cast %46 : vector<16xf32> to vector<16x1xf32>
    %48 = tpu.reciprocal %47 {approx = true} : vector<16x1xf32> -> vector<16x1xf32>
    %49 = vector.broadcast %48 : vector<16x1xf32> to vector<16x16xf32>
    %50 = arith.mulf %45, %49 : vector<16x16xf32>
    %cst_23 = arith.constant dense<0.000000e+00> : vector<16x32xf32>
    %51 = tpu.matmul %50, %37, %cst_23 {dimension_numbers = #tpu.dot_dimension_numbers<[1], [0], [0], [1], [0, 0, 1, 1], [], []>} : vector<16x16xf32>, vector<16x32xf32>, vector<16x32xf32> -> vector<16x32xf32>
    %52 = vector.extract_strided_slice %51 {offsets = [0, 0], sizes = [8, 32], strides = [1, 1]} : vector<16x32xf32> to vector<8x32xf32>
    %53 = vector.extract_strided_slice %51 {offsets = [8, 0], sizes = [8, 32], strides = [1, 1]} : vector<16x32xf32> to vector<8x32xf32>
    %54 = tpu.concatenate %52, %53 in 1 : vector<8x32xf32>, vector<8x32xf32> -> vector<8x64xf32>
    %cst_24 = arith.constant dense<0.000000e+00> : vector<8x32xf32>
    %55 = tpu.matmul %54, %5, %cst_24 {dimension_numbers = #tpu.dot_dimension_numbers<[1], [0], [0], [1], [0, 0, 1, 1], [], []>} : vector<8x64xf32>, vector<64x32xf32>, vector<8x32xf32> -> vector<8x32xf32>
    %56 = arith.addf %1, %55 : vector<8x32xf32>
    %57 = vector.shape_cast %7 : vector<32xf32> to vector<1x32xf32>
    %58 = vector.broadcast %57 : vector<1x32xf32> to vector<8x32xf32>
    %59 = arith.addf %56, %58 : vector<8x32xf32>
    %cst_25 = arith.constant dense<0.000000e+00> : vector<8xf32>
    %60 = vector.multi_reduction <add>, %59, %cst_25 [1] : vector<8x32xf32> to vector<8xf32>
    %61 = vector.shape_cast %60 : vector<8xf32> to vector<8x1xf32>
    %cst_26 = arith.constant 3.200000e+01 : f32
    %62 = vector.broadcast %cst_26 : f32 to vector<8x1xf32>
    %63 = arith.divf %61, %62 : vector<8x1xf32>
    %64 = vector.broadcast %63 : vector<8x1xf32> to vector<8x32xf32>
    %65 = arith.subf %59, %64 : vector<8x32xf32>
    %66 = arith.mulf %65, %65 : vector<8x32xf32>
    %cst_27 = arith.constant dense<0.000000e+00> : vector<8xf32>
    %67 = vector.multi_reduction <add>, %66, %cst_27 [1] : vector<8x32xf32> to vector<8xf32>
    %68 = vector.shape_cast %67 : vector<8xf32> to vector<8x1xf32>
    %cst_28 = arith.constant 3.200000e+01 : f32
    %69 = vector.broadcast %cst_28 : f32 to vector<8x1xf32>
    %70 = arith.divf %68, %69 : vector<8x1xf32>
    %71 = vector.broadcast %63 : vector<8x1xf32> to vector<8x32xf32>
    %72 = arith.subf %59, %71 : vector<8x32xf32>
    %cst_29 = arith.constant 9.99999974E-6 : f32
    %73 = vector.broadcast %cst_29 : f32 to vector<8x1xf32>
    %74 = arith.addf %70, %73 : vector<8x1xf32>
    %75 = math.sqrt %74 : vector<8x1xf32>
    %76 = vector.broadcast %75 : vector<8x1xf32> to vector<8x32xf32>
    %77 = arith.divf %72, %76 : vector<8x32xf32>
    %78 = vector.shape_cast %9 : vector<32xf32> to vector<1x32xf32>
    %79 = vector.broadcast %78 : vector<1x32xf32> to vector<8x32xf32>
    %80 = arith.mulf %79, %77 : vector<8x32xf32>
    %81 = vector.shape_cast %11 : vector<32xf32> to vector<1x32xf32>
    %82 = vector.broadcast %81 : vector<1x32xf32> to vector<8x32xf32>
    %83 = arith.addf %80, %82 : vector<8x32xf32>
    %c2_i32_30 = arith.constant 2 : i32
    %84 = vector.broadcast %c2_i32_30 : i32 to vector<8x32xi32>
    %85 = arith.cmpi sge, %13, %84 : vector<8x32xi32>
    %c2_i32_31 = arith.constant 2 : i32
    %86 = tpu.dynamic_rotate %83 by %c2_i32_31 dim 0 : vector<8x32xf32>, i32 -> vector<8x32xf32>
    %cst_32 = arith.constant 0.000000e+00 : f32
    %87 = vector.broadcast %cst_32 : f32 to vector<8x32xf32>
    %88 = arith.select %85, %86, %87 : vector<8x32xi1>, vector<8x32xf32>
    %c1_i32_33 = arith.constant 1 : i32
    %89 = vector.broadcast %c1_i32_33 : i32 to vector<8x32xi32>
    %90 = arith.cmpi sge, %13, %89 : vector<8x32xi32>
    %c1_i32_34 = arith.constant 1 : i32
    %91 = tpu.dynamic_rotate %83 by %c1_i32_34 dim 0 : vector<8x32xf32>, i32 -> vector<8x32xf32>
    %cst_35 = arith.constant 0.000000e+00 : f32
    %92 = vector.broadcast %cst_35 : f32 to vector<8x32xf32>
    %93 = arith.select %90, %91, %92 : vector<8x32xi1>, vector<8x32xf32>
    %94 = tpu.concatenate %88, %93, %83 in 1 : vector<8x32xf32>, vector<8x32xf32>, vector<8x32xf32> -> vector<8x96xf32>
    %cst_36 = arith.constant dense<0.000000e+00> : vector<8x192xf32>
    %95 = tpu.matmul %94, %2, %cst_36 {dimension_numbers = #tpu.dot_dimension_numbers<[1], [0], [0], [1], [0, 0, 1, 1], [], []>} : vector<8x96xf32>, vector<96x192xf32>, vector<8x192xf32> -> vector<8x192xf32>
    %96 = vector.shape_cast %4 : vector<192xf32> to vector<1x192xf32>
    %97 = vector.broadcast %96 : vector<1x192xf32> to vector<8x192xf32>
    %98 = arith.addf %95, %97 : vector<8x192xf32>
    %99 = vector.extract_strided_slice %98 {offsets = [0, 0], sizes = [8, 32], strides = [1, 1]} : vector<8x192xf32> to vector<8x32xf32>
    %100 = vector.extract_strided_slice %98 {offsets = [0, 32], sizes = [8, 32], strides = [1, 1]} : vector<8x192xf32> to vector<8x32xf32>
    %101 = tpu.concatenate %99, %100 in 0 : vector<8x32xf32>, vector<8x32xf32> -> vector<16x32xf32>
    %102 = vector.extract_strided_slice %98 {offsets = [0, 64], sizes = [8, 32], strides = [1, 1]} : vector<8x192xf32> to vector<8x32xf32>
    %103 = vector.extract_strided_slice %98 {offsets = [0, 96], sizes = [8, 32], strides = [1, 1]} : vector<8x192xf32> to vector<8x32xf32>
    %104 = tpu.concatenate %102, %103 in 0 : vector<8x32xf32>, vector<8x32xf32> -> vector<16x32xf32>
    %105 = vector.extract_strided_slice %98 {offsets = [0, 128], sizes = [8, 32], strides = [1, 1]} : vector<8x192xf32> to vector<8x32xf32>
    %106 = vector.extract_strided_slice %98 {offsets = [0, 160], sizes = [8, 32], strides = [1, 1]} : vector<8x192xf32> to vector<8x32xf32>
    %107 = tpu.concatenate %105, %106 in 0 : vector<8x32xf32>, vector<8x32xf32> -> vector<16x32xf32>
    %108 = tpu.transpose %104, [1, 0] : vector<16x32xf32> -> vector<32x16xf32>
    %cst_37 = arith.constant dense<0.000000e+00> : vector<16x16xf32>
    %109 = tpu.matmul %101, %108, %cst_37 {dimension_numbers = #tpu.dot_dimension_numbers<[1], [0], [0], [1], [0, 0, 1, 1], [], []>} : vector<16x32xf32>, vector<32x16xf32>, vector<16x16xf32> -> vector<16x16xf32>
    %110 = arith.addf %109, %12 : vector<16x16xf32>
    %cst_38 = arith.constant dense<0xFF800000> : vector<16xf32>
    %111 = vector.multi_reduction <maximumf>, %110, %cst_38 [1] : vector<16x16xf32> to vector<16xf32>
    %112 = vector.shape_cast %111 : vector<16xf32> to vector<16x1xf32>
    %113 = vector.broadcast %112 : vector<16x1xf32> to vector<16x16xf32>
    %114 = arith.subf %110, %113 : vector<16x16xf32>
    %115 = math.exp %114 : vector<16x16xf32>
    %cst_39 = arith.constant dense<0.000000e+00> : vector<16xf32>
    %116 = vector.multi_reduction <add>, %115, %cst_39 [1] : vector<16x16xf32> to vector<16xf32>
    %117 = vector.shape_cast %116 : vector<16xf32> to vector<16x1xf32>
    %118 = tpu.reciprocal %117 {approx = true} : vector<16x1xf32> -> vector<16x1xf32>
    %119 = vector.broadcast %118 : vector<16x1xf32> to vector<16x16xf32>
    %120 = arith.mulf %115, %119 : vector<16x16xf32>
    %cst_40 = arith.constant dense<0.000000e+00> : vector<16x32xf32>
    %121 = tpu.matmul %120, %107, %cst_40 {dimension_numbers = #tpu.dot_dimension_numbers<[1], [0], [0], [1], [0, 0, 1, 1], [], []>} : vector<16x16xf32>, vector<16x32xf32>, vector<16x32xf32> -> vector<16x32xf32>
    %122 = vector.extract_strided_slice %121 {offsets = [0, 0], sizes = [8, 32], strides = [1, 1]} : vector<16x32xf32> to vector<8x32xf32>
    %123 = vector.extract_strided_slice %121 {offsets = [8, 0], sizes = [8, 32], strides = [1, 1]} : vector<16x32xf32> to vector<8x32xf32>
    %124 = tpu.concatenate %122, %123 in 1 : vector<8x32xf32>, vector<8x32xf32> -> vector<8x64xf32>
    %cst_41 = arith.constant dense<0.000000e+00> : vector<8x32xf32>
    %125 = tpu.matmul %124, %5, %cst_41 {dimension_numbers = #tpu.dot_dimension_numbers<[1], [0], [0], [1], [0, 0, 1, 1], [], []>} : vector<8x64xf32>, vector<64x32xf32>, vector<8x32xf32> -> vector<8x32xf32>
    %126 = arith.addf %83, %125 : vector<8x32xf32>
    %127 = vector.shape_cast %7 : vector<32xf32> to vector<1x32xf32>
    %128 = vector.broadcast %127 : vector<1x32xf32> to vector<8x32xf32>
    %129 = arith.addf %126, %128 : vector<8x32xf32>
    %cst_42 = arith.constant dense<0.000000e+00> : vector<8xf32>
    %130 = vector.multi_reduction <add>, %129, %cst_42 [1] : vector<8x32xf32> to vector<8xf32>
    %131 = vector.shape_cast %130 : vector<8xf32> to vector<8x1xf32>
    %cst_43 = arith.constant 3.200000e+01 : f32
    %132 = vector.broadcast %cst_43 : f32 to vector<8x1xf32>
    %133 = arith.divf %131, %132 : vector<8x1xf32>
    %134 = vector.broadcast %133 : vector<8x1xf32> to vector<8x32xf32>
    %135 = arith.subf %129, %134 : vector<8x32xf32>
    %136 = arith.mulf %135, %135 : vector<8x32xf32>
    %cst_44 = arith.constant dense<0.000000e+00> : vector<8xf32>
    %137 = vector.multi_reduction <add>, %136, %cst_44 [1] : vector<8x32xf32> to vector<8xf32>
    %138 = vector.shape_cast %137 : vector<8xf32> to vector<8x1xf32>
    %cst_45 = arith.constant 3.200000e+01 : f32
    %139 = vector.broadcast %cst_45 : f32 to vector<8x1xf32>
    %140 = arith.divf %138, %139 : vector<8x1xf32>
    %141 = vector.broadcast %133 : vector<8x1xf32> to vector<8x32xf32>
    %142 = arith.subf %129, %141 : vector<8x32xf32>
    %cst_46 = arith.constant 9.99999974E-6 : f32
    %143 = vector.broadcast %cst_46 : f32 to vector<8x1xf32>
    %144 = arith.addf %140, %143 : vector<8x1xf32>
    %145 = math.sqrt %144 : vector<8x1xf32>
    %146 = vector.broadcast %145 : vector<8x1xf32> to vector<8x32xf32>
    %147 = arith.divf %142, %146 : vector<8x32xf32>
    %148 = vector.shape_cast %9 : vector<32xf32> to vector<1x32xf32>
    %149 = vector.broadcast %148 : vector<1x32xf32> to vector<8x32xf32>
    %150 = arith.mulf %149, %147 : vector<8x32xf32>
    %151 = vector.shape_cast %11 : vector<32xf32> to vector<1x32xf32>
    %152 = vector.broadcast %151 : vector<1x32xf32> to vector<8x32xf32>
    %153 = arith.addf %150, %152 : vector<8x32xf32>
    %c0_47 = arith.constant 0 : index
    %c0_48 = arith.constant 0 : index
    %c0_49 = arith.constant 0 : index
    %154 = vector.load %arg9[%c0_47, %c0_48, %c0_49] : memref<1x8x32xf32, #tpu.memory_space<vmem>>, vector<1x8x32xf32>
    %155 = vector.shape_cast %154 : vector<1x8x32xf32> to vector<8x32xf32>
    %156 = vector.shape_cast %153 : vector<8x32xf32> to vector<1x8x32xf32>
    tpu.vector_store %arg9[%c0_47, %c0_48, %c0_49], %156 {strides = array<i32>} : memref<1x8x32xf32, #tpu.memory_space<vmem>>, vector<1x8x32xf32>,
    return
  }
  func.func @transform_0(%arg0: i32) -> (i32, i32, i32) {
    %c0_i32 = arith.constant 0 : i32
    %c0_i32_0 = arith.constant 0 : i32
    %c0_i32_1 = arith.constant 0 : i32
    return %arg0, %c0_i32, %c0_i32_0 : i32, i32, i32
  }
  func.func @transform_1(%arg0: i32) -> (i32, i32) {
    %c0_i32 = arith.constant 0 : i32
    %c0_i32_0 = arith.constant 0 : i32
    %c0_i32_1 = arith.constant 0 : i32
    return %c0_i32, %c0_i32_0 : i32, i32
  }
  func.func @transform_2(%arg0: i32) -> (i32, i32) {
    %c0_i32 = arith.constant 0 : i32
    %c0_i32_0 = arith.constant 0 : i32
    %c0_i32_1 = arith.constant 0 : i32
    return %c0_i32, %c0_i32_0 : i32, i32
  }
  func.func @transform_3(%arg0: i32) -> (i32, i32) {
    %c0_i32 = arith.constant 0 : i32
    %c0_i32_0 = arith.constant 0 : i32
    %c0_i32_1 = arith.constant 0 : i32
    return %c0_i32, %c0_i32_0 : i32, i32
  }
  func.func @transform_4(%arg0: i32) -> (i32, i32) {
    %c0_i32 = arith.constant 0 : i32
    %c0_i32_0 = arith.constant 0 : i32
    %c0_i32_1 = arith.constant 0 : i32
    return %c0_i32, %c0_i32_0 : i32, i32
  }
  func.func @transform_5(%arg0: i32) -> (i32, i32) {
    %c0_i32 = arith.constant 0 : i32
    %c0_i32_0 = arith.constant 0 : i32
    %c0_i32_1 = arith.constant 0 : i32
    return %c0_i32, %c0_i32_0 : i32, i32
  }
  func.func @transform_6(%arg0: i32) -> (i32, i32) {
    %c0_i32 = arith.constant 0 : i32
    %c0_i32_0 = arith.constant 0 : i32
    %c0_i32_1 = arith.constant 0 : i32
    return %c0_i32, %c0_i32_0 : i32, i32
  }
  func.func @transform_7(%arg0: i32) -> (i32, i32) {
    %c0_i32 = arith.constant 0 : i32
    %c0_i32_0 = arith.constant 0 : i32
    %c0_i32_1 = arith.constant 0 : i32
    return %c0_i32, %c0_i32_0 : i32, i32
  }
  func.func @transform_8(%arg0: i32) -> (i32, i32, i32) {
    %c0_i32 = arith.constant 0 : i32
    %c0_i32_0 = arith.constant 0 : i32
    %c0_i32_1 = arith.constant 0 : i32
    return %arg0, %c0_i32, %c0_i32_0 : i32, i32, i32
  }
}

</mosaic_0001>

<bundles_post_ra>
// kernel: tpu_custom_call.1
= control target key start
LH: loop header
LB: loop body
LE: loop exit
PB: predicated region body
PF: predicated region fallthrough
CT: control target
= control target key end

     0   :  { %13 = vsyncpa [#allocation3], 0  ;;  %s2085_s0 = inlined_call_operand.vmem [shape: f32[2,8,32], index: 0, kind: input, shape index: {}]   ;;  %s2086_s1 = inlined_call_operand.hbm [shape: f32[96,192], index: 1, kind: input, shape index: {}]   ;;  %s2087_s2 = inlined_call_operand.vmem [shape: f32[1,192], index: 2, kind: input, shape index: {}]   ;;  %s2088_s3 = inlined_call_operand.vmem [shape: f32[64,32], index: 3, kind: input, shape index: {}]   ;;  %s2089_s4 = inlined_call_operand.vmem [shape: f32[1,32], index: 4, kind: input, shape index: {}]   ;;  %s2090_s5 = inlined_call_operand.vmem [shape: f32[1,32], index: 5, kind: input, shape index: {}]   ;;  %s2091_s6 = inlined_call_operand.vmem [shape: f32[1,32], index: 6, kind: input, shape index: {}]   ;;  %s2092_s7 = inlined_call_operand.vmem [shape: f32[16,16], index: 7, kind: input, shape index: {}]   ;;  %s2093_s8 = inlined_call_operand.hbm [shape: f32[2,8,32], index: 8, kind: output, shape index: {}]  }
   0x1   :  { %14 = vsyncpa [#allocation4], 0 }
   0x2   :  { %16 = vsyncpa [#allocation4 + $0x1], 0  ;;  %s1719_s27 = smov 0   ;;  %s1721_s28 = smov 0  }
   0x3   :  { %s1723_s29 = smov 0   ;;  %s1725_s30 = smov 0  }
   0x4 LB: > { %s1740_s9 = sadd.s32 4294967295, %s1662_s30   ;;  %s1253_s10 = sadd.s32 4294967294, %s1662_s30   ;;  %s1662_s30 = sphi %s1725_s30, %s2111_s30   ;;  %s1658_s29 = sphi %s1723_s29, %s2110_s29   ;;  %s1654_s28 = sphi %s1721_s28, %s2109_s28   ;;  %s1650_s27 = sphi %s1719_s27, %s2108_s27  }
   0x5   : > { %s1744_s11 = sadd.s32 1, %s1662_s30   ;;  %s202_s12 = sadd.s32 1, %s1658_s29 }
   0x6   : > { %s199_s13 = ssub.s32 %s1662_s30, %s1744_s11  ;;  %p212_p0 = scmp.ne.s32.totalorder %s1658_s29, %s1654_s28 }
   0x7   : > { %p200_p1 = scmp.eq.s32.totalorder %s199_s13, 0  ;;  %p213_p2 = scmp.eq.s32.totalorder %s1740_s9, 1 }
   0x8   : > { %p218_p3 = scmp.ne.s32.totalorder %s1654_s28, %s1650_s27  ;;  %p219_p4 = scmp.eq.s32.totalorder %s1253_s10, 1 }
   0x9   : > { %s1755_s14 = scalar_select %p200_p1, %s1658_s29, %s202_s12  }
   0xa   : > { %p1757_p5 = por %p213_p2, %p212_p0  ;;  %p1761_p6 = por %p219_p4, %p218_p3 }
   0xb   : > { %p1254_p7 = scmp.ge.s32.totalorder %s1662_s30, 1  ;;  %p226_p8 = scmp.lt.s32.totalorder %s1662_s30, 3 }
   0xc   : > { %s2097_s15 = scalar_select %p1757_p5, 1, 0 }
   0xd   : > { %s2098_s16 = scalar_select %p1761_p6, 1, 0 }
   0xe   : > { %p2094_p9 = scmp.eq.s32.totalorder %s1740_s9, 0  ;;  %p1768_p10 = pnand %p1254_p7, %p226_p8 }
   0xf   : > { %s1664_s18 = smov [#allocation2]   ;;  %s1568_s23 = scalar_lea.hbm %s2086_s1, 3072 }
  0x10   : > { %s2099_s17 = scalar_select %p1768_p10, 1, 0 }
  0x11   : > { %s238_s19 = sshll.u32 %s1664_s18, 4  ;;  %p1482_p11 = pneg %p1768_p10  ;;  %s239_s19 = int_to_ptr.vmem [resolvable:$true] %s238_s19 }
  0x12   : > { %p1569_p13 = scmp.ne.s32.totalorder %s2086_s1, %s1568_s23  ;;  %p1575_p3 = scmp.lt.u32.totalorder %s1568_s23, %s2086_s1 }
  0x13   : > { %p1776_p12 = pnand %p2094_p9, %p1482_p11 }
  0x15   : > { %p1570_p0 = pneg %p1776_p12 }
  0x17   : > { %p1571_p1 = pnand %p1570_p0, %p1569_p13 }
  0x19   : > { %p1572_p2 = pneg %p1571_p1 }
  0x1b   : > { %p1577_p4 = pnand %p1575_p3, %p1572_p2 }
  0x1d   : > { %1580 = shalt.err (!%p1577_p4)
}
  0x1e   : > { %s1581_s12 = scalar_lea.vmem %s239_s19, 3072  ;;  %p1589_p9 = scmp.lt.s32.totalorder %s239_s19, %s239_s19 }
  0x1f   : > { %p1582_p7 = scmp.ne.s32.totalorder %s239_s19, %s1581_s12  ;;  %p1590_p6 = scmp.lt.s32.totalorder %s1581_s12, %s1581_s12 }
  0x21   : > { %p1584_p8 = pnand %p1582_p7, %p1570_p0  ;;  %p1591_p5 = por %p1590_p6, %p1589_p9 }
  0x23   : > { %p1585_p11 = pneg %p1584_p8 }
  0x25   : > { %p1592_p10 = pnand %p1591_p5, %p1585_p11 }
  0x27   : > { %1595 = shalt.err (!%p1592_p10)
}
  0x28   : > { %s1665_s13 = smov 256   ;;  %s1666_s18 = smov 16  }
  0x29   : > { %1485 = dma.hbm_to_vmem [thread:$0]  (!%p1776_p12), %s2086_s1, 3072, %s239_s19, [#allocation3], %s1665_s13, %s1665_s13, %s1666_s18  }
  0x2a   : > { %p2101_p13 = scmp.ne.s32.totalorder %s2099_s17, 0 }
  0x2b   : > { %p2102_p1 = scmp.eq.s32.totalorder (!%p2101_p13), %s1740_s9, 0 }
  0x2c   : > { %279 = sbr.rel (%p2101_p13) target bundleno = 4042 (0xfca), region = 52 }
  0x33   : > { %1641 = dma.done.wait (%p2102_p1), [#allocation3], 3072   ;;  %p2103_p0 = pmov %p2102_p1 }
  0x34   : > { %p312_p5 = scmp.lt.s32.totalorder %s1740_s9, 1  ;;  %v355_v0 = vlaneseq  ;;  %v1667_v1 = vmov 0.0   ;;  %v318_v4 = vld [vmem:[#allocation2 + $0x8] sm:$0xff]  ;;  %v320_v5 = vld [vmem:[#allocation2 + $0x18] sm:$0xff]  ;;  %v317_v8 = vld [vmem:[#allocation2] sm:$0xff]  ;;  %s1668_s25 = smov 32  }
  0x35   : > { %1643 = vsyncadd (%p2103_p0), [#allocation3], 4294964224  ;;  %454 = vmatprep.mubr.f32.mxu0 %v1667_v1  ;;  %v1814_v7 = vpack.c.bf16 %v320_v5, %v318_v4  ;;  %v319_v9 = vld [vmem:[#allocation2 + $0x10] sm:$0xff]  ;;  %v322_v10 = vld [vmem:[#allocation2 + $0x28] sm:$0xff]  ;;  %s1669_s26 = smov 64   ;;  %vm371_vm2 = vcmask 261120  }
  0x36   : > { %s313_s23 = scalar_select %p312_p5, %s1740_s9, 1  ;;  %v1805_v2 = vshrl.u32 %v355_v0, 7  ;;  %v1816_v11 = vpack.c.bf16 %v319_v9, %v317_v8  ;;  %v324_v12 = vld [vmem:[#allocation2 + $0x38] sm:$0xff]  ;;  %v321_v13 = vld [vmem:[#allocation2 + $0x20] sm:$0xff]  ;;  %v323_v14 = vld [vmem:[#allocation2 + $0x30] sm:$0xff]  ;;  %vm373_vm3 = vcmask 523264  }
  0x37   : > { %1385 = vmatprep.subr.bf16.mxu0 %v1814_v7  ;;  %v1821_v16 = vpack.c.bf16 %v324_v12, %v322_v10  ;;  %v326_v17 = vld [vmem:[#allocation2 + $0x48] sm:$0xff]  ;;  %v328_v18 = vld [vmem:[#allocation2 + $0x58] sm:$0xff]  ;;  %v1825_v19 = vpack.c.bf16 %v323_v14, %v321_v13  ;;  %v325_v21 = vld [vmem:[#allocation2 + $0x40] sm:$0xff]  ;;  %vm386_vm4 = vcmask 785408   ;;  %s1670_s13 = smov 96   ;;  %vm555_vm6 = vcmask 130048  }
  0x38   : > { %s1260_s19 = sshll.u32 %s313_s23, 3  ;;  %vm360_vm0 = vcmp.ge.s32.totalorder %v1805_v2, 1  ;;  %1387 = vmatpush1.bf16.msra.mxu0 %v1816_v11  ;;  %v1828_v20 = vpack.c.bf16 %v328_v18, %v326_v17  ;;  %v327_v22 = vld [vmem:[#allocation2 + $0x50] sm:$0xff]  ;;  %v330_v23 = vld [vmem:[#allocation2 + $0x68] sm:$0xff]  ;;  %v332_v24 = vld [vmem:[#allocation2 + $0x78] sm:$0xff]  ;;  %vm357_vm1 = vcmp.ge.s32.totalorder %v1805_v2, 2 }
  0x39   : > { %s315_s24 = scalar_lea.vmem %s2085_s0, %s1260_s19  ;;  %1389 = vmatprep.subr.bf16.mxu0 %v1821_v16  ;;  %v1833_v25 = vpack.c.bf16 %v327_v22, %v325_v21  ;;  %v1836_v26 = vpack.c.bf16 %v332_v24, %v330_v23  ;;  %v329_v27 = vld [vmem:[#allocation2 + $0x60] sm:$0xff]  ;;  %v331_v28 = vld [vmem:[#allocation2 + $0x70] sm:$0xff]  ;;  %v334_v29 = vld [vmem:[#allocation2 + $0x88] sm:$0xff]  ;;  %v378_v48 = vsub.s32 0, %v1805_v2  ;;  %v382_v9 = vsub.s32 1, %v1805_v2  ;;  %p2106_p9 = scmp.ne.s32.totalorder %s2097_s15, 0 }
  0x3a   : > { %v1810_v3 = vld [vmem:[%s315_s24] sm:$0xff]  ;;  %v336_v30 = vld [vmem:[#allocation2 + $0x98] sm:$0xff]  ;;  %v1839_v31 = vpack.c.bf16 %v331_v28, %v329_v27  ;;  %v335_v34 = vld [vmem:[#allocation2 + $0x90] sm:$0xff]  ;;  %vm1672_vm7 = vmmov 0   ;;  %s1673_s22 = smov [#allocation5]  }
  0x3b   : > { %v361_v6 = vrot.slane %v1810_v3, 7  ;;  %v1842_v32 = vpack.c.bf16 %v336_v30, %v334_v29  ;;  %v333_v33 = vld [vmem:[#allocation2 + $0x80] sm:$0xff]  ;;  %v338_v35 = vld [vmem:[#allocation2 + $0xa8] sm:$0xff]  ;;  %v340_v36 = vld [vmem:[#allocation2 + $0xb8] sm:$0xff]  ;;  %v358_v42 = vrot.slane %v1810_v3, 6  ;;  %s1600_s23 = sshll.u32 %s1673_s22, 4  ;;  %s1601_s23 = int_to_ptr.vmem [resolvable:$false] %s1600_s23 }
  0x3c   : > { %1391 = vmatpush1.bf16.msra.mxu0 %v1825_v19  ;;  %v1845_v37 = vpack.c.bf16 %v335_v34, %v333_v33  ;;  %v1848_v38 = vpack.c.bf16 %v340_v36, %v338_v35  ;;  %v337_v39 = vld [vmem:[#allocation2 + $0xa0] sm:$0xff]  ;;  %v339_v40 = vld [vmem:[#allocation2 + $0xb0] sm:$0xff]  ;;  %vm1874_vm5 = vmpackc.low %vm371_vm2, %vm371_vm2  ;;  %s1602_s19 = scalar_lea.vmem %s1601_s23, 256 }
  0x3d   : > { %v362_v15 = vsel %vm360_vm0, %v361_v6, 0.0  ;;  %1393 = vmatprep.subr.bf16.mxu0 %v1828_v20  ;;  %v1851_v41 = vpack.c.bf16 %v339_v40, %v337_v39  ;;  %v359_v44 = vsel %vm357_vm1, %v358_v42, 0.0  ;;  %v341_v49 = vld [vmem:[%s2087_s2] sm:$0x3]  ;;  %v1886_v61 = vld [vmem:[%s2092_s7 + $0x8] sm:$0xff]  ;;  %v349_v40 = vld [vmem:[%s2088_s3 + $0x38] sm:$0xff] }
  0x3e   : > { %364 = vrot.lane.b32.xlu0 %v362_v15, %s1668_s25  ;;  %v1866_v50 = vrot.slane %v341_v49, %v378_v48  ;;  %v1891_v62 = vld [vmem:[%s2092_s7] sm:$0xff]  ;;  %v1898_v10 = vrot.slane %v341_v49, %v382_v9 }
  0x3f   : > { %v1976_v9 = vld [vmem:[%s2090_s5] ss:$0 sm:$0xff] }
  0x40   : > { %1395 = vmatpush1.bf16.msra.mxu0 %v1833_v25 }
  0x41   : > { %1397 = vmatprep.subr.bf16.mxu0 %v1836_v26 }
  0x42   : > { %368 = vrot.lane.b32.xlu0 %v1810_v3, %s1669_s26 }
  0x44   : > { %1399 = vmatpush1.bf16.msra.mxu0 %v1839_v31 }
  0x45   : > { %1401 = vmatprep.subr.bf16.mxu0 %v1842_v32 }
  0x48   : > { %1403 = vmatpush1.bf16.msra.mxu0 %v1845_v37 }
  0x49   : > { %1405 = vmatprep.subr.bf16.mxu0 %v1848_v38 }
  0x4c   : > { %1407 = vmatpush1.bf16.msra.mxu0 %v1851_v41 }
  0xb0   : > { %v365_v43 = vpop.permute.xlu0 %364 }
  0xb1   : > { %v372_v45 = vsel %vm371_vm2, %v359_v44, %v365_v43 }
  0xb4   : > { %v369_v46 = vpop.permute.xlu0 %368 }
  0xb5   : > { %v374_v47 = vsel %vm373_vm3, %v372_v45, %v369_v46 }
  0xb6   : > { %1261 = vmatmul.mubr.msk.f32.vlgmr.msra.gmra.mrb[0].mxu0 %vm386_vm4, %v374_v47  ;;  %v1967_v47 = vld [vmem:[%s2089_s4] ss:$0 sm:$0xff] }
 0x189   : > { %v456_v51 = vpop.f32.mrb[0].mxu0 }
 0x18a   : > { %v457_v52 = vadd.f32 %v456_v51, %v1866_v50  ;;  %v458_v53 = vpop.f32.mrb[1].mxu0 }
 0x18b   : > { %v459_v12 = vadd.f32 %v458_v53, %v1898_v10 }
 0x18c   : > { %462 = vrot.lane.b32.xlu1 %v457_v52, %s1670_s13  ;;  %1322 = vmatprep.mubr.msk.f32.mxu1 %vm371_vm2, %v457_v52 }
 0x1fe   : > { %v463_v54 = vpop.permute.xlu1 %462 }
 0x1ff   : > { %v1534_v55 = vpack.i.bf16 %v463_v54, %v457_v52 }
 0x201   : > { %1535 = vrot.lane.b32.xlu1 %v1534_v55, %s1669_s26 }
 0x273   : > { %v1536_v56 = vpop.permute.xlu1 %1535 }
 0x274   : > { %v1538_v57 = vunpack.i.h.bf16 %v1536_v56  ;;  %v1537_v58 = vunpack.i.l.bf16 %v1536_v56 }
 0x276   : > { %v1408_v60 = vpack.c.bf16 %v1538_v57, %v1537_v58 }
 0x278   : > { %1410 = vmatprep.subr.msk.bf16.mxu1 %vm1874_vm5, %v1408_v60 }
 0x279   : > { %1413 = vmatpush3.bf16.xpose.msk.msra.mxu1 %vm1874_vm5, %v1408_v60 }
 0x280   : > { %1323 = vmatmul.mubr.msk.f32.vlgmr.msra.gmra.mrb[0].mxu1 %vm371_vm2, %v463_v54 }
 0x281   : > { %1348 = vmatprep.mubr.msk.f32.mxu1 %vm1672_vm7, %v1667_v1 }
 0x353   : > { %v1324_v63 = vpop.f32.mrb[0].mxu1 }
 0x354   : > { %v552_v0 = vadd.f32 %v1324_v63, %v1886_v61  ;;  %v546_v4 = vpop.f32.mrb[1].mxu1 }
 0x355   : > { %v547_v5 = vadd.f32 %v546_v4, %v1891_v62 }
 0x356   : > { %v559_v6 = vsel %vm555_vm6, %v552_v0, -inf }
 0x357   : > { %560 = vmax.xlane.f32.xlu1 %v559_v6  ;;  %v556_v8 = vsel %vm555_vm6, %v547_v5, -inf }
 0x358   : > { %557 = vmax.xlane.f32.xlu0 %v556_v8 }
 0x368   : > { %465 = vrot.lane.b32.xlu1 %v459_v12, %s1670_s13 }
 0x3e4   : > { %v561_v13 = vpop.xlane.xlu1 %560 }
 0x3e5   : > { %v563_v14 = vsub.f32 %v552_v0, %v561_v13  ;;  %v558_v15 = vpop.xlane.xlu0 %557  ;;  %v1981_v13 = vld [vmem:[%s2091_s6] ss:$0 sm:$0xff] }
 0x3e6   : > { %v562_v17 = vsub.f32 %v547_v5, %v558_v15 }
 0x3e7   : > { %v566_v18 = vmul.f32 1.442695, %v563_v14 }
 0x3e8   : > { %v564_v21 = vmul.f32 1.442695, %v562_v17  ;;  %v466_v22 = vpop.permute.xlu1 %465 }
 0x3e9   : > { %v1414_v23 = vpack.c.bf16 %v466_v22, %v459_v12 }
 0x3ea   : > { %1544 = vpow2.f32 %v564_v21 }
 0x3eb   : > { %1415 = vmatprep.subr.bf16.mxu0 %v1414_v23  ;;  %1546 = vpow2.f32 %v566_v18 }
 0x3ec   : > { %1417 = vmatpush3.bf16.msra.mxu0 %v1414_v23 }
 0x3ed   : > { %1431 = vmatprep.subr.bf16.mxu0 %v1814_v7  ;;  %v342_v7 = vld [vmem:[%s2088_s3] sm:$0xff] }
 0x3f4   : > { %v1545_v24 = vpop.eup %1544 }
 0x3f5   : > { %v568_v27 = vsel %vm555_vm6, %v1545_v24, 0.0  ;;  %v1547_v28 = vpop.eup %1546 }
 0x3f6   : > { %569 = vadd.xlane.f32.xlu0 %v568_v27  ;;  %v571_v29 = vsel %vm555_vm6, %v1547_v28, 0.0 }
 0x3fa   : > { %572 = vadd.xlane.f32.xlu0 %v571_v29 }
 0x483   : > { %v570_v30 = vpop.xlane.xlu0 %569 }
 0x484   : > { %1548 = vrcp.f32 %v570_v30 }
 0x487   : > { %v573_v33 = vpop.xlane.xlu0 %572 }
 0x488   : > { %1550 = vrcp.f32 %v573_v33 }
 0x48e   : > { %v1549_v34 = vpop.eup %1548 }
 0x48f   : > { %v576_v35 = vmul.f32 %v1549_v34, %v1545_v24 }
 0x491   : > { %1329 = vmatprep.mubr.msk.f32.mxu0 %vm555_vm6, %v576_v35 }
 0x492   : > { %v1551_v36 = vpop.eup %1550 }
 0x493   : > { %v577_v39 = vmul.f32 %v1551_v36, %v1547_v28 }
 0x495   : > { %1330 = vmatmul.mubr.msk.f32.vlgmr.msra.gmra.mrb[2].mxu0 %vm555_vm6, %v577_v39 }
 0x496   : > { %1433 = vmatpush1.bf16.msra.mxu0 %v1816_v11  ;;  %861 = vmatprep.mubr.f32.mxu0 %v1667_v1  ;;  %v343_v11 = vld [vmem:[%s2088_s3 + $0x8] sm:$0xff] }
 0x497   : > { %1435 = vmatprep.subr.bf16.mxu0 %v1821_v16  ;;  %v344_v16 = vld [vmem:[%s2088_s3 + $0x10] sm:$0xff] }
 0x49a   : > { %1437 = vmatpush1.bf16.msra.mxu0 %v1825_v19  ;;  %v1671_v19 = vmov 0.0|0.0  }
 0x49b   : > { %1439 = vmatprep.subr.bf16.mxu0 %v1828_v20  ;;  %1418 = vmatprep.subr.bf16.mxu1 %v1671_v19  ;;  %v1929_v20 = vpack.c.bf16 %v343_v11, %v342_v7 }
 0x49d   : > { %1420 = vmatpush3.bf16.msra.mxu1 %v1929_v20 }
 0x49e   : > { %1441 = vmatpush1.bf16.msra.mxu0 %v1833_v25  ;;  %v345_v25 = vld [vmem:[%s2088_s3 + $0x18] sm:$0xff]  ;;  %1421 = vmatprep.subr.bf16.mxu1 %v1671_v19 }
 0x49f   : > { %1443 = vmatprep.subr.bf16.mxu0 %v1836_v26  ;;  %v1935_v26 = vpack.c.bf16 %v345_v25, %v344_v16 }
 0x4a1   : > { %1423 = vmatpush3.bf16.msra.mxu1 %v1935_v26 }
 0x4a2   : > { %1445 = vmatpush1.bf16.msra.mxu0 %v1839_v31  ;;  %v346_v31 = vld [vmem:[%s2088_s3 + $0x20] sm:$0xff]  ;;  %1424 = vmatprep.subr.bf16.mxu1 %v1671_v19 }
 0x4a3   : > { %1447 = vmatprep.subr.bf16.mxu0 %v1842_v32  ;;  %v347_v32 = vld [vmem:[%s2088_s3 + $0x28] sm:$0xff] }
 0x4a6   : > { %1449 = vmatpush1.bf16.msra.mxu0 %v1845_v37  ;;  %v1945_v37 = vpack.c.bf16 %v347_v32, %v346_v31 }
 0x4a7   : > { %1451 = vmatprep.subr.bf16.mxu0 %v1848_v38  ;;  %v348_v38 = vld [vmem:[%s2088_s3 + $0x30] sm:$0xff] }
 0x4a8   : > { %1426 = vmatpush3.bf16.msra.mxu1 %v1945_v37 }
 0x4a9   : > { %1427 = vmatprep.subr.bf16.mxu1 %v1671_v19 }
 0x4aa   : > { %1453 = vmatpush1.bf16.msra.mxu0 %v1851_v41  ;;  %v1955_v41 = vpack.c.bf16 %v349_v40, %v348_v38 }
 0x4ac   : > { %1429 = vmatpush3.bf16.msra.mxu1 %v1955_v41 }
 0x568   : > { %v1331_v42 = vpop.f32.mrb[2].mxu0 }
 0x569   : > { %660 = vrot.lane.b32.xlu0 %v1331_v42, %s1668_s25  ;;  %v650_v43 = vpop.f32.mrb[3].mxu0 }
 0x5db   : > { %v661_v44 = vpop.permute.xlu0 %660 }
 0x5dc   : > { %v663_v45 = vsel %vm371_vm2, %v650_v43, %v661_v44 }
 0x5dd   : > { %1349 = vmatmul.mubr.msk.f32.vlgmr.msra.gmra.mrb[2].mxu1 %vm373_vm3, %v663_v45 }
 0x6b0   : > { %v733_v46 = vpop.f32.mrb[2].mxu1 }
 0x6b1   : > { %v737_v48 = vadd.f32 %v733_v46, %v1810_v3  ;;  %v1350_v49 = vpop.f32.mrb[3].mxu1 }
 0x6b3   : > { %v744_v51 = vadd.f32 %v1967_v47, %v737_v48 }
 0x6b5   : > { %v745_v52 = vsel %vm371_vm2, %v744_v51, 0.0 }
 0x6b6   : > { %746 = vadd.xlane.f32.xlu1 %v745_v52 }
 0x743   : > { %v747_v53 = vpop.xlane.xlu1 %746 }
 0x744   : > { %v749_v54 = vmul.f32 0.03125, %v747_v53 }
 0x746   : > { %v750_v55 = vsub.f32 %v744_v51, %v749_v54 }
 0x748   : > { %v751_v56 = vmul.f32 %v750_v55, %v750_v55 }
 0x74a   : > { %v752_v57 = vsel %vm371_vm2, %v751_v56, 0.0 }
 0x74b   : > { %753 = vadd.xlane.f32.xlu0 %v752_v57 }
 0x7d8   : > { %v754_v58 = vpop.xlane.xlu0 %753 }
 0x7d9   : > { %v755_v60 = vmul.f32 0.03125, %v754_v58 }
 0x7db   : > { %v756_v63 = vadd.f32 1e-05, %v755_v60 }
 0x7dd   : > { %1552 = vrsqrt.f32 %v756_v63  ;;  %vm759_vm8 = vcmp.eq.f32.partialorder %v756_v63, inf  ;;  %v762_v3 = vand.u32 2147483648, %v756_v63  ;;  %vm761_vm9 = vcmp.eq.f32.partialorder %v756_v63, 0.0 }
 0x7e7   : > { %v1553_v0 = vpop.eup %1552 }
 0x7e8   : > { %v758_v4 = vmul.f32 %v1553_v0, %v756_v63 }
 0x7ea   : > { %v760_v5 = vsel %vm759_vm8, %v756_v63, %v758_v4 }
 0x7eb   : > { %v763_v6 = vsel %vm761_vm9, %v762_v3, %v760_v5 }
 0x7ec   : > { %1554 = vrcp.f32 %v763_v6 }
 0x7f6   : > { %v1555_v8 = vpop.eup %1554 }
 0x7f7   : > { %v765_v12 = vmul.f32 %v1555_v8, %v750_v55 }
 0x7f9   : > { %v772_v14 = vmul.f32 %v1976_v9, %v765_v12 }
 0x7fb   : > { %v1985_v15 = vadd.f32 %v1981_v13, %v772_v14 }
 0x7fd   : > { %789 = vrot.lane.b32.xlu0 %v1985_v15, %s1669_s26  ;;  %v782_v17 = vrot.slane %v1985_v15, 7  ;;  %v780_v21 = vrot.slane %v1985_v15, 6 }
 0x7ff   : > { %v783_v18 = vsel %vm360_vm0, %v782_v17, 0.0  ;;  %v781_v23 = vsel %vm357_vm1, %v780_v21, 0.0 }
 0x800   : > { %785 = vrot.lane.b32.xlu1 %v783_v18, %s1668_s25 }
 0x86f   : > { %v790_v24 = vpop.permute.xlu0 %789 }
 0x872   : > { %v786_v22 = vpop.permute.xlu1 %785 }
 0x873   : > { %v792_v27 = vsel %vm371_vm2, %v781_v23, %v786_v22 }
 0x874   : > { %v793_v28 = vsel %vm373_vm3, %v792_v27, %v790_v24 }
 0x875   : > { %1272 = vmatmul.mubr.msk.f32.vlgmr.msra.gmra.mrb[4].mxu0 %vm386_vm4, %v793_v28 }
 0x948   : > { %v863_v29 = vpop.f32.mrb[4].mxu0 }
 0x949   : > { %v864_v30 = vadd.f32 %v863_v29, %v1866_v50  ;;  %v865_v33 = vpop.f32.mrb[5].mxu0 }
 0x94a   : > { %v866_v38 = vadd.f32 %v865_v33, %v1898_v10 }
 0x94b   : > { %869 = vrot.lane.b32.xlu1 %v864_v30, %s1670_s13  ;;  %1355 = vmatprep.mubr.msk.f32.mxu1 %vm371_vm2, %v864_v30 }
 0x9bd   : > { %v870_v34 = vpop.permute.xlu1 %869 }
 0x9be   : > { %v1539_v35 = vpack.i.bf16 %v870_v34, %v864_v30 }
 0x9c0   : > { %1540 = vrot.lane.b32.xlu1 %v1539_v35, %s1669_s26 }
 0xa32   : > { %v1541_v2 = vpop.permute.xlu1 %1540 }
 0xa33   : > { %v1543_v36 = vunpack.i.h.bf16 %v1541_v2  ;;  %v1542_v39 = vunpack.i.l.bf16 %v1541_v2 }
 0xa35   : > { %v1454_v7 = vpack.c.bf16 %v1543_v36, %v1542_v39 }
 0xa37   : > { %1456 = vmatprep.subr.msk.bf16.mxu1 %vm1874_vm5, %v1454_v7 }
 0xa38   : > { %1459 = vmatpush3.bf16.xpose.msk.msra.mxu1 %vm1874_vm5, %v1454_v7 }
 0xa3f   : > { %1356 = vmatmul.mubr.msk.f32.vlgmr.msra.gmra.mrb[4].mxu1 %vm371_vm2, %v870_v34 }
 0xb12   : > { %v1357_v50 = vpop.f32.mrb[4].mxu1 }
 0xb13   : > { %v959_v11 = vadd.f32 %v1357_v50, %v1886_v61  ;;  %v953_v16 = vpop.f32.mrb[5].mxu1 }
 0xb14   : > { %v954_v25 = vadd.f32 %v953_v16, %v1891_v62 }
 0xb15   : > { %v965_v31 = vsel %vm555_vm6, %v959_v11, -inf }
 0xb16   : > { %966 = vmax.xlane.f32.xlu1 %v965_v31  ;;  %v962_v32 = vsel %vm555_vm6, %v954_v25, -inf }
 0xb17   : > { %963 = vmax.xlane.f32.xlu0 %v962_v32 }
 0xb27   : > { %872 = vrot.lane.b32.xlu1 %v866_v38, %s1670_s13  ;;  %s1281_s13 = sshll.u32 %s1740_s9, 7 }
 0xb28   : > { %s2042_s18 = scalar_lea.hbm %s2093_s8, %s1281_s13 }
 0xba3   : > { %v967_v59 = vpop.xlane.xlu1 %966 }
 0xba4   : > { %v969_v40 = vsub.f32 %v959_v11, %v967_v59  ;;  %v964_v42 = vpop.xlane.xlu0 %963 }
 0xba5   : > { %v968_v43 = vsub.f32 %v954_v25, %v964_v42 }
 0xba6   : > { %v972_v44 = vmul.f32 1.442695, %v969_v40 }
 0xba7   : > { %v970_v45 = vmul.f32 1.442695, %v968_v43  ;;  %v873_v61 = vpop.permute.xlu1 %872 }
 0xba8   : > { %v1460_v46 = vpack.c.bf16 %v873_v61, %v866_v38 }
 0xba9   : > { %1556 = vpow2.f32 %v970_v45 }
 0xbaa   : > { %1461 = vmatprep.subr.bf16.mxu1 %v1460_v46  ;;  %1558 = vpow2.f32 %v972_v44 }
 0xbab   : > { %1463 = vmatpush3.bf16.msra.mxu1 %v1460_v46 }
 0xbac   : > { %1464 = vmatprep.subr.bf16.mxu1 %v1671_v19 }
 0xbb3   : > { %v1557_v62 = vpop.eup %1556 }
 0xbb4   : > { %v974_v48 = vsel %vm555_vm6, %v1557_v62, 0.0  ;;  %v1559_v10 = vpop.eup %1558 }
 0xbb5   : > { %975 = vadd.xlane.f32.xlu0 %v974_v48  ;;  %v977_v49 = vsel %vm555_vm6, %v1559_v10, 0.0 }
 0xbb9   : > { %978 = vadd.xlane.f32.xlu0 %v977_v49 }
 0xc42   : > { %v976_v51 = vpop.xlane.xlu0 %975 }
 0xc43   : > { %1560 = vrcp.f32 %v976_v51 }
 0xc46   : > { %v979_v52 = vpop.xlane.xlu0 %978 }
 0xc47   : > { %1562 = vrcp.f32 %v979_v52 }
 0xc4d   : > { %v1561_v53 = vpop.eup %1560 }
 0xc4e   : > { %v982_v54 = vmul.f32 %v1561_v53, %v1557_v62 }
 0xc50   : > { %1362 = vmatprep.mubr.msk.f32.mxu1 %vm555_vm6, %v982_v54 }
 0xc51   : > { %v1563_v55 = vpop.eup %1562 }
 0xc52   : > { %v983_v56 = vmul.f32 %v1563_v55, %v1559_v10 }
 0xc54   : > { %1363 = vmatmul.mubr.msk.f32.vlgmr.msra.gmra.mrb[6].mxu1 %vm555_vm6, %v983_v56 }
 0xc55   : > { %1466 = vmatpush3.bf16.msra.mxu1 %v1929_v20  ;;  %1381 = vmatprep.mubr.msk.f32.mxu1 %vm1672_vm7, %v1667_v1 }
 0xc56   : > { %1467 = vmatprep.subr.bf16.mxu1 %v1671_v19 }
 0xc59   : > { %1469 = vmatpush3.bf16.msra.mxu1 %v1935_v26 }
 0xc5a   : > { %1470 = vmatprep.subr.bf16.mxu1 %v1671_v19 }
 0xc5d   : > { %1472 = vmatpush3.bf16.msra.mxu1 %v1945_v37 }
 0xc5e   : > { %1473 = vmatprep.subr.bf16.mxu1 %v1671_v19 }
 0xc61   : > { %1475 = vmatpush3.bf16.msra.mxu1 %v1955_v41 }
 0xd27   : > { %v1364_v57 = vpop.f32.mrb[6].mxu1 }
 0xd28   : > { %1066 = vrot.lane.b32.xlu0 %v1364_v57, %s1668_s25  ;;  %v1056_v58 = vpop.f32.mrb[7].mxu1  ;;  %s309_s25 = sand.u32 1, %s1654_s28  }
 0xd29   : > { %s1259_s26 = sshll.u32 %s309_s25, 3  ;;  %s1169_s21 = scalar_lea.sflag [#allocation4], %s309_s25 }
 0xd2a   : > { %s311_s17 = scalar_lea.vmem [#allocation5], %s1259_s26 }
 0xd2b   : > { %s1182_s24 = sshll.u32 %s311_s17, 4  ;;  %s2044_s24 = int_to_ptr.vmem [resolvable:$true] %s1182_s24 }
 0xd2c   : > { %s1596_s9 = scalar_lea.vmem %s2044_s24, 128  ;;  %p1603_p2 = scmp.lt.s32.totalorder %s2044_s24, %s1601_s23 }
 0xd2d   : > { %p1597_p6 = scmp.ne.s32.totalorder %s2044_s24, %s1596_s9  ;;  %p1604_p3 = scmp.lt.s32.totalorder %s1602_s19, %s1596_s9 }
 0xd2f   : > { %p1598_p10 = pnand %p1597_p6, %p2106_p9  ;;  %p1605_p4 = por %p1604_p3, %p1603_p2 }
 0xd31   : > { %p1599_p12 = pneg %p1598_p10 }
 0xd33   : > { %p1606_p7 = pnand %p1605_p4, %p1599_p12 }
 0xd9a   : > { %v1067_v20 = vpop.permute.xlu0 %1066 }
 0xd9b   : > { %v1069_v60 = vsel %vm371_vm2, %v1056_v58, %v1067_v20 }
 0xd9c   : > { %1382 = vmatmul.mubr.msk.f32.vlgmr.msra.gmra.mrb[8].mxu1 %vm373_vm3, %v1069_v60 }
 0xe6f   : > { %v1139_v1 = vpop.f32.mrb[8].mxu1 }
 0xe70   : > { %v1143_v26 = vadd.f32 %v1139_v1, %v1985_v15  ;;  %v1383_v63 = vpop.f32.mrb[9].mxu1 }
 0xe72   : > { %v1144_v0 = vadd.f32 %v1967_v47, %v1143_v26 }
 0xe74   : > { %v1145_v37 = vsel %vm371_vm2, %v1144_v0, 0.0 }
 0xe75   : > { %1146 = vadd.xlane.f32.xlu1 %v1145_v37 }
 0xf02   : > { %v1147_v19 = vpop.xlane.xlu1 %1146 }
 0xf03   : > { %v1148_v41 = vmul.f32 0.03125, %v1147_v19 }
 0xf05   : > { %v1149_v4 = vsub.f32 %v1144_v0, %v1148_v41 }
 0xf07   : > { %v1150_v3 = vmul.f32 %v1149_v4, %v1149_v4 }
 0xf09   : > { %v1151_v5 = vsel %vm371_vm2, %v1150_v3, 0.0 }
 0xf0a   : > { %1152 = vadd.xlane.f32.xlu0 %v1151_v5 }
 0xf97   : > { %v1153_v6 = vpop.xlane.xlu0 %1152 }
 0xf98   : > { %v1154_v8 = vmul.f32 0.03125, %v1153_v6 }
 0xf9a   : > { %v1155_v12 = vadd.f32 1e-05, %v1154_v8 }
 0xf9c   : > { %1564 = vrsqrt.f32 %v1155_v12  ;;  %vm1158_vm10 = vcmp.eq.f32.partialorder %v1155_v12, inf  ;;  %v1161_v47 = vand.u32 2147483648, %v1155_v12  ;;  %vm1160_vm11 = vcmp.eq.f32.partialorder %v1155_v12, 0.0 }
 0xfa6   : > { %v1565_v14 = vpop.eup %1564 }
 0xfa7   : > { %v1157_v15 = vmul.f32 %v1565_v14, %v1155_v12 }
 0xfa9   : > { %v1159_v17 = vsel %vm1158_vm10, %v1155_v12, %v1157_v15 }
 0xfaa   : > { %v1162_v18 = vsel %vm1160_vm11, %v1161_v47, %v1159_v17 }
 0xfab   : > { %1566 = vrcp.f32 %v1162_v18 }
 0xfb5   : > { %v1567_v21 = vpop.eup %1566 }
 0xfb6   : > { %v1164_v22 = vmul.f32 %v1567_v21, %v1149_v4 }
 0xfb8   : > { %v1165_v23 = vmul.f32 %v1976_v9, %v1164_v22 }
 0xfba   : > { %v1166_v24 = vadd.f32 %v1981_v13, %v1165_v23 }
 0xfbc   : > { %1167 = vst.msk [vmem:[%s311_s17] sm:$0xff] %vm371_vm2, %v1166_v24 }
 0xfbd   : > { %1609 = shalt.err (!%p1606_p7)
}
 0xfbe   : > { %s1610_s20 = scalar_lea.hbm %s2042_s18, 128  ;;  %s1614_s13 = scalar_lea.hbm %s2093_s8, 256 }
 0xfbf   : > { %p1611_p8 = scmp.ne.s32.totalorder %s2042_s18, %s1610_s20  ;;  %p1615_p1 = scmp.lt.u32.totalorder %s2042_s18, %s2093_s8 }
 0xfc0   : > { %p1616_p0 = scmp.lt.u32.totalorder %s1614_s13, %s1610_s20  ;;  %p1618_p6 = scmp.lt.u32.totalorder %s1610_s20, %s2042_s18 }
 0xfc1   : > { %p1612_p11 = pnand %p1611_p8, %p2106_p9 }
 0xfc2   : > { %p1617_p5 = por %p1616_p0, %p1615_p1 }
 0xfc3   : > { %p1613_p13 = pneg %p1612_p11 }
 0xfc4   : > { %p1619_p10 = por %p1618_p6, %p1617_p5 }
 0xfc6   : > { %p1620_p12 = pnand %p1619_p10, %p1613_p13 }
 0xfc8   : > { %1623 = shalt.err (!%p1620_p12)
}
 0xfc9   : > { %1480 = dma.vmem_to_hbm [thread:$0]  (%p2106_p9), %s2044_s24, 128, %s2042_s18, %s1169_s21  }
 0xfca PF: > { %p1492_p2 = scmp.ge.s32.totalorder %s1662_s30, 2  ;;  %s1194_s12 = sand.u32 1, %s1650_s27  }
 0xfcb   : > { %p2107_p3 = scmp.ne.s32.totalorder %s2098_s16, 0  ;;  %s1195_s9 = scalar_lea.sflag [#allocation4], %s1194_s12 }
 0xfcd   : > { %p1487_p4 = pnand %p1492_p2, %p2107_p3 }
 0xfcf   : > { %1645 = dma.done.wait (!%p1487_p4), %s1195_s9, 128  }
 0xfd0   : > { %1647 = vsyncadd (!%p1487_p4), %s1195_s9, 4294967168  ;;  %p19_p7 = scmp.ge.s32.totalorder %s1744_s11, 4   ;;  %s2108_s27 = smov %s1654_s28 }
 0xfd1   : > { %s2109_s28 = smov %s1658_s29  ;;  %s2110_s29 = smov %s1755_s14 }
 0xfd2   : > { %s2111_s30 = smov %s1744_s11  ;;  %21 = sbr.rel (!%p19_p7) target bundleno = 4 (0x4), region = 92 }
 0xfd9   :  { %1200 = vsyncpa [#allocation3], 1 }
 0xfda   :  { %1202 = vsyncpa [#allocation3 + $0x1], 1 }
 0xfdb   :  { %1203 = vsyncpa [#allocation4], 1 }
 0xfdc   :  { %1205 = vsyncpa [#allocation4 + $0x1], 1 }

</bundles_post_ra>
